<compile_context>
chip_gen: v6e
topology: v6e:2x2x1
jax: 0.10.0
libtpu: 0.0.40
codegen_flags: <defaults>
</compile_context>

<pallas_src>
import math
import jax
import jax.numpy as jnp
from jax.experimental import pallas as pl
from jax.experimental.pallas import tpu as pltpu

# ---- small "config" (consistent with MistralConfig fields used) ----
B = 2            # batch
S = 8            # seq_len
H = 32           # hidden_size
NUM_HEADS = 4
NUM_KV_HEADS = 2
HEAD_DIM = H // NUM_HEADS          # 8
GROUPS = NUM_HEADS // NUM_KV_HEADS
INTER = 64                         # intermediate_size
EPS = 1e-6                         # rms_norm_eps
ROPE_THETA = 10000.0
NEG_INF = -1e9

BS = B * S                         # 16 packed token rows
Q_W = NUM_HEADS * HEAD_DIM         # 32
KV_W = NUM_KV_HEADS * HEAD_DIM     # 16

# ---- fused weight slab layout (lane offsets); note Q_W == H here so W_o's
# (Q_W, H) rows line up with the (H, ...) projection weights. ----
W_GU = 2 * INTER                   # 128 (gate|up, exactly lane-dense)
W_QKV = 2 * Q_W + 3 * KV_W         # 112 (q | rot(q) | k | rot(k) | v)
OFF_GU = 0
OFF_QKV = OFF_GU + W_GU            # 128 (vreg-aligned slice start)
OFF_WO = OFF_QKV + W_QKV           # 240
WSLAB_W = OFF_WO + H               # 272

# ---- activation slab layout (lane offsets) ----
OFF_X = 0
OFF_COS = H                        # 32
OFF_SIN = OFF_COS + HEAD_DIM       # 40
OFF_BIAS = OFF_SIN + HEAD_DIM      # 48
ACT_W = OFF_BIAS + BS              # 64


def decoder_layer_kernel(act_ref, w_ref, wd_ref, out_ref):
    act = act_ref[...]                                  # (BS, 64), single load
    x = act[:, OFF_X:OFF_X + H]                         # (BS, H) residual input
    cos = act[:, OFF_COS:OFF_COS + HEAD_DIM]            # (BS, D)
    sin = act[:, OFF_SIN:OFF_SIN + HEAD_DIM]            # (BS, D)
    bias = act[:, OFF_BIAS:OFF_BIAS + BS]               # (BS, BS) additive mask

    w = w_ref[...]                                      # (H, 272), single load
    w_gu = w[:, OFF_GU:OFF_GU + W_GU]                   # (H, 128) gate|up (g2 folded)
    w_qkv = w[:, OFF_QKV:OFF_QKV + W_QKV]               # (H, 112) fused QKV (g1, scale, rot folded)
    wo = w[:, OFF_WO:OFF_WO + H]                         # (Q_W, H)

    # ---- input RMSNorm (gamma folded into w_qkv rows) ----
    var = jnp.mean(x * x, axis=-1, keepdims=True)
    xn = x * jax.lax.rsqrt(var + EPS)

    # ---- single fused QKV(+rotate-half copies) projection ----
    y = jnp.dot(xn, w_qkv, preferred_element_type=jnp.float32)   # (BS, 112)
    q = y[:, 0:Q_W]                                       # scaled by 1/sqrt(D)
    qr = y[:, Q_W:2 * Q_W]                                # rotate_half(q), scaled
    k = y[:, 2 * Q_W:2 * Q_W + KV_W]
    kr = y[:, 2 * Q_W + KV_W:2 * Q_W + 2 * KV_W]
    v = y[:, 2 * Q_W + 2 * KV_W:W_QKV]

    D = HEAD_DIM
    # ---- head-batched layout (NUM_HEADS, BS, D); GQA expansion via h//GROUPS ----
    qh = jnp.stack([q[:, h * D:(h + 1) * D] for h in range(NUM_HEADS)], axis=0)
    qrh = jnp.stack([qr[:, h * D:(h + 1) * D] for h in range(NUM_HEADS)], axis=0)
    kh = jnp.stack([k[:, (h // GROUPS) * D:(h // GROUPS + 1) * D]
                    for h in range(NUM_HEADS)], axis=0)
    krh = jnp.stack([kr[:, (h // GROUPS) * D:(h // GROUPS + 1) * D]
                     for h in range(NUM_HEADS)], axis=0)
    vh = jnp.stack([v[:, (h // GROUPS) * D:(h // GROUPS + 1) * D]
                    for h in range(NUM_HEADS)], axis=0)

    # ---- RoPE (rotate_half/sign already folded into the qr/kr weight copies) ----
    qh = qh * cos[None] + qrh * sin[None]
    kh = kh * cos[None] + krh * sin[None]

    # ---- batched scores + ONE masked softmax for all heads ----
    s = jnp.einsum('hqd,hkd->hqk', qh, kh,
                   preferred_element_type=jnp.float32)    # (NUM_HEADS, BS, BS)
    s = s + bias[None]                                    # same-batch ∧ causal bias
    s = s - jnp.max(s, axis=-1, keepdims=True)
    p = jnp.exp(s)
    p = p * pl.reciprocal(jnp.sum(p, axis=-1, keepdims=True), approx=True)

    # ---- batched PV, lane re-pack, single W_o matmul ----
    pv = jnp.einsum('hqk,hkd->hqd', p, vh,
                    preferred_element_type=jnp.float32)   # (NUM_HEADS, BS, D)
    pv_packed = jnp.concatenate([pv[h] for h in range(NUM_HEADS)], axis=-1)  # (BS, Q_W)
    attn_out = jnp.dot(pv_packed, wo, preferred_element_type=jnp.float32)    # (BS, H)

    h1 = x + attn_out                                     # first residual

    # ---- post-attention RMSNorm (gamma folded into w_gu rows) ----
    var2 = jnp.mean(h1 * h1, axis=-1, keepdims=True)
    h1n = h1 * jax.lax.rsqrt(var2 + EPS)

    # ---- SwiGLU MLP: single fused gate|up matmul (128 lanes), then down ----
    gu = jnp.dot(h1n, w_gu, preferred_element_type=jnp.float32)   # (BS, 128)
    g = gu[:, :INTER]
    u = gu[:, INTER:]
    act_g = g * jax.nn.sigmoid(g)
    mlp = jnp.dot(act_g * u, wd_ref[...], preferred_element_type=jnp.float32)

    out_ref[...] = h1 + mlp                               # second residual


def _rotate_half_weight(w, n_heads):
    """Fold HF rotate_half into the weight's output columns (per head block)."""
    in_f = w.shape[0]
    wh = w.reshape(in_f, n_heads, HEAD_DIM)
    w1 = wh[..., :HEAD_DIM // 2]
    w2 = wh[..., HEAD_DIM // 2:]
    return jnp.concatenate([-w2, w1], axis=-1).reshape(in_f, n_heads * HEAD_DIM)


def mistral_decoder_layer(hidden_states, cos, sin, params):
    (rms1, rms2, wq, wk, wv, wo, wg, wu, wd) = params

    # ---- wrapper-side layout / constant folding (all XLA ops, trace-time) ----
    x2d = hidden_states.reshape(BS, H)                 # flatten batch into rows
    scale = 1.0 / math.sqrt(HEAD_DIM)
    g1 = rms1.reshape(H, 1)                            # fold RMSNorm gammas into
    g2 = rms2.reshape(H, 1)                            # downstream weight rows

    wq_s = wq * scale                                  # fold score scale into Wq
    wq_r = _rotate_half_weight(wq, NUM_HEADS) * scale  # rotate_half + sign folded
    wk_r = _rotate_half_weight(wk, NUM_KV_HEADS)

    w_qkv = jnp.concatenate([wq_s, wq_r, wk, wk_r, wv], axis=1) * g1   # (H, 112)
    w_gu = jnp.concatenate([wg, wu], axis=1) * g2                      # (H, 128)
    w_slab = jnp.concatenate([w_gu, w_qkv, wo], axis=1)                # (H, 272)

    # cos/sin only tiled to (BS, HEAD_DIM); head tiling happens via broadcast
    cos_rows = jnp.tile(cos, (B, 1))                   # (BS, D)
    sin_rows = jnp.tile(sin, (B, 1))

    # same-batch + causal additive bias over packed rows
    r = jnp.arange(BS)
    valid = ((r[:, None] // S) == (r[None, :] // S)) & (r[None, :] <= r[:, None])
    bias = jnp.where(valid, 0.0, NEG_INF).astype(jnp.float32)          # (BS, BS)

    act_slab = jnp.concatenate([x2d, cos_rows, sin_rows, bias], axis=1)  # (BS, 64)

    full = lambda shape: pl.BlockSpec(shape, lambda i: tuple(0 for _ in shape))

    out2d = pl.pallas_call(
        decoder_layer_kernel,
        out_shape=jax.ShapeDtypeStruct((BS, H), jnp.float32),
        grid=(1,),                                     # single invocation
        in_specs=[
            full((BS, ACT_W)),      # activation slab: x | cos | sin | mask bias
            full((H, WSLAB_W)),     # weight slab: gate|up | fused QKV | W_o
            full((INTER, H)),       # W_down
        ],
        out_specs=full((BS, H)),
        compiler_params=pltpu.CompilerParams(
            dimension_semantics=("arbitrary",)),
        cost_estimate=pl.CostEstimate(
            flops=376832, transcendentals=2144, bytes_accessed=49152),
    )(act_slab, w_slab, wd)

    return out2d.reshape(B, S, H)


# ---------------- pure-JAX reference (same math, no Pallas) ----------------
def reference(hidden_states, cos, sin, params):
    (rms1, rms2, wq, wk, wv, wo, wg, wu, wd) = params

    def rmsnorm(x, w):
        var = jnp.mean(x * x, axis=-1, keepdims=True)
        return x * jax.lax.rsqrt(var + EPS) * w[0]

    def rope(t):
        d2 = HEAD_DIM // 2
        rot = jnp.concatenate([-t[..., d2:], t[..., :d2]], axis=-1)
        return t * cos[None, :, None, :] + rot * sin[None, :, None, :]

    x = hidden_states
    xn = rmsnorm(x, rms1)
    q = (xn @ wq).reshape(B, S, NUM_HEADS, HEAD_DIM)
    k = (xn @ wk).reshape(B, S, NUM_KV_HEADS, HEAD_DIM)
    v = (xn @ wv).reshape(B, S, NUM_KV_HEADS, HEAD_DIM)
    q, k = rope(q), rope(k)
    k = jnp.repeat(k, GROUPS, axis=2)
    v = jnp.repeat(v, GROUPS, axis=2)
    s = jnp.einsum("bqhd,bkhd->bhqk", q, k) / math.sqrt(HEAD_DIM)
    mask = jnp.tril(jnp.ones((S, S), bool))
    s = jnp.where(mask[None, None], s, NEG_INF)
    p = jax.nn.softmax(s, axis=-1)
    attn = jnp.einsum("bhqk,bkhd->bqhd", p, v).reshape(B, S, NUM_HEADS * HEAD_DIM)
    h1 = x + attn @ wo
    h1n = rmsnorm(h1, rms2)
    g = h1n @ wg
    mlp = (jax.nn.silu(g) * (h1n @ wu)) @ wd
    return h1 + mlp


if __name__ == "__main__":
    key = jax.random.PRNGKey(0)
    ks = jax.random.split(key, 12)

    hidden_states = jax.random.normal(ks[0], (B, S, H), jnp.float32)

    scale = 0.05
    rms1 = 1.0 + 0.1 * jax.random.normal(ks[1], (1, H), jnp.float32)
    rms2 = 1.0 + 0.1 * jax.random.normal(ks[2], (1, H), jnp.float32)
    wq = scale * jax.random.normal(ks[3], (H, Q_W), jnp.float32)
    wk = scale * jax.random.normal(ks[4], (H, KV_W), jnp.float32)
    wv = scale * jax.random.normal(ks[5], (H, KV_W), jnp.float32)
    wo = scale * jax.random.normal(ks[6], (Q_W, H), jnp.float32)
    wg = scale * jax.random.normal(ks[7], (H, INTER), jnp.float32)
    wu = scale * jax.random.normal(ks[8], (H, INTER), jnp.float32)
    wd = scale * jax.random.normal(ks[9], (INTER, H), jnp.float32)
    params = (rms1, rms2, wq, wk, wv, wo, wg, wu, wd)

    # rotary embedding tables (HF MistralRotaryEmbedding, position_ids = arange(S))
    inv_freq = 1.0 / (ROPE_THETA ** (jnp.arange(0, HEAD_DIM, 2, dtype=jnp.float32) / HEAD_DIM))
    pos = jnp.arange(S, dtype=jnp.float32)
    freqs = pos[:, None] * inv_freq[None, :]            # (S, D/2)
    emb = jnp.concatenate([freqs, freqs], axis=-1)      # (S, D)
    cos, sin = jnp.cos(emb), jnp.sin(emb)

    out = mistral_decoder_layer(hidden_states, cos, sin, params)
    out = jax.block_until_ready(out)

    ref = reference(hidden_states, cos, sin, params)
    assert out.shape == (B, S, H)
    # Tolerance loosened vs 1e-4 because the softmax denominator uses the
    # EUP approximate reciprocal (pl.reciprocal(..., approx=True)).
    assert jnp.allclose(out, ref, atol=2e-3, rtol=2e-3), \
        f"max err {jnp.max(jnp.abs(out - ref))}"

    print("KERNEL_OK")
</pallas_src>

<mosaic_0001>
module attributes {stable_mosaic.version = 11 : i64} {
  func.func @decoder_layer_kernel(%arg0: i32, %arg1: memref<16x64xf32, #tpu.memory_space<vmem>>, %arg2: memref<32x272xf32, #tpu.memory_space<vmem>>, %arg3: memref<64x32xf32, #tpu.memory_space<vmem>>, %arg4: memref<16x32xf32, #tpu.memory_space<vmem>>) attributes {dimension_semantics = [#tpu.dimension_semantics<arbitrary>], iteration_bounds = array<i64: 1>, scalar_prefetch = 0 : i64, scratch_operands = 0 : i64, tpu.core_type = #tpu.core_type<tc>, window_params = [{pipeline_mode = #tpu.pipeline_mode<synchronous>, transform_indices = @transform_0, window_bounds = array<i64: 16, 64>}, {pipeline_mode = #tpu.pipeline_mode<synchronous>, transform_indices = @transform_1, window_bounds = array<i64: 32, 272>}, {pipeline_mode = #tpu.pipeline_mode<synchronous>, transform_indices = @transform_2, window_bounds = array<i64: 64, 32>}, {pipeline_mode = #tpu.pipeline_mode<synchronous>, transform_indices = @transform_3, window_bounds = array<i64: 16, 32>}]} {
    %c0 = arith.constant 0 : index
    %c0_0 = arith.constant 0 : index
    %0 = vector.load %arg1[%c0, %c0_0] : memref<16x64xf32, #tpu.memory_space<vmem>>, vector<16x64xf32>
    %1 = vector.extract_strided_slice %0 {offsets = [0, 0], sizes = [16, 32], strides = [1, 1]} : vector<16x64xf32> to vector<16x32xf32>
    %2 = vector.extract_strided_slice %0 {offsets = [0, 32], sizes = [16, 8], strides = [1, 1]} : vector<16x64xf32> to vector<16x8xf32>
    %3 = vector.extract_strided_slice %0 {offsets = [0, 40], sizes = [16, 8], strides = [1, 1]} : vector<16x64xf32> to vector<16x8xf32>
    %4 = vector.extract_strided_slice %0 {offsets = [0, 48], sizes = [16, 16], strides = [1, 1]} : vector<16x64xf32> to vector<16x16xf32>
    %c0_1 = arith.constant 0 : index
    %c0_2 = arith.constant 0 : index
    %5 = vector.load %arg2[%c0_1, %c0_2] : memref<32x272xf32, #tpu.memory_space<vmem>>, vector<32x272xf32>
    %6 = vector.extract_strided_slice %5 {offsets = [0, 0], sizes = [32, 128], strides = [1, 1]} : vector<32x272xf32> to vector<32x128xf32>
    %7 = vector.extract_strided_slice %5 {offsets = [0, 128], sizes = [32, 112], strides = [1, 1]} : vector<32x272xf32> to vector<32x112xf32>
    %8 = vector.extract_strided_slice %5 {offsets = [0, 240], sizes = [32, 32], strides = [1, 1]} : vector<32x272xf32> to vector<32x32xf32>
    %9 = arith.mulf %1, %1 : vector<16x32xf32>
    %cst = arith.constant dense<0.000000e+00> : vector<16xf32>
    %10 = vector.multi_reduction <add>, %9, %cst [1] : vector<16x32xf32> to vector<16xf32>
    %11 = vector.shape_cast %10 : vector<16xf32> to vector<16x1xf32>
    %cst_3 = arith.constant 3.200000e+01 : f32
    %12 = vector.broadcast %cst_3 : f32 to vector<16x1xf32>
    %13 = arith.divf %11, %12 : vector<16x1xf32>
    %cst_4 = arith.constant 9.99999997E-7 : f32
    %14 = vector.broadcast %cst_4 : f32 to vector<16x1xf32>
    %15 = arith.addf %13, %14 : vector<16x1xf32>
    %16 = math.rsqrt %15 : vector<16x1xf32>
    %17 = vector.broadcast %16 : vector<16x1xf32> to vector<16x32xf32>
    %18 = arith.mulf %1, %17 : vector<16x32xf32>
    %cst_5 = arith.constant dense<0.000000e+00> : vector<16x112xf32>
    %19 = tpu.matmul %18, %7, %cst_5 {dimension_numbers = #tpu.dot_dimension_numbers<[1], [0], [0], [1], [0, 0, 1, 1], [], []>} : vector<16x32xf32>, vector<32x112xf32>, vector<16x112xf32> -> vector<16x112xf32>
    %20 = vector.extract_strided_slice %19 {offsets = [0, 0], sizes = [16, 32], strides = [1, 1]} : vector<16x112xf32> to vector<16x32xf32>
    %21 = vector.extract_strided_slice %19 {offsets = [0, 32], sizes = [16, 32], strides = [1, 1]} : vector<16x112xf32> to vector<16x32xf32>
    %22 = vector.extract_strided_slice %19 {offsets = [0, 64], sizes = [16, 16], strides = [1, 1]} : vector<16x112xf32> to vector<16x16xf32>
    %23 = vector.extract_strided_slice %19 {offsets = [0, 80], sizes = [16, 16], strides = [1, 1]} : vector<16x112xf32> to vector<16x16xf32>
    %24 = vector.extract_strided_slice %19 {offsets = [0, 96], sizes = [16, 16], strides = [1, 1]} : vector<16x112xf32> to vector<16x16xf32>
    %25 = vector.extract_strided_slice %20 {offsets = [0, 0], sizes = [16, 8], strides = [1, 1]} : vector<16x32xf32> to vector<16x8xf32>
    %26 = vector.extract_strided_slice %20 {offsets = [0, 8], sizes = [16, 8], strides = [1, 1]} : vector<16x32xf32> to vector<16x8xf32>
    %27 = vector.extract_strided_slice %20 {offsets = [0, 16], sizes = [16, 8], strides = [1, 1]} : vector<16x32xf32> to vector<16x8xf32>
    %28 = vector.extract_strided_slice %20 {offsets = [0, 24], sizes = [16, 8], strides = [1, 1]} : vector<16x32xf32> to vector<16x8xf32>
    %29 = vector.shape_cast %25 : vector<16x8xf32> to vector<1x16x8xf32>
    %30 = vector.shape_cast %26 : vector<16x8xf32> to vector<1x16x8xf32>
    %31 = vector.shape_cast %27 : vector<16x8xf32> to vector<1x16x8xf32>
    %32 = vector.shape_cast %28 : vector<16x8xf32> to vector<1x16x8xf32>
    %33 = tpu.concatenate %29, %30, %31, %32 in 0 : vector<1x16x8xf32>, vector<1x16x8xf32>, vector<1x16x8xf32>, vector<1x16x8xf32> -> vector<4x16x8xf32>
    %34 = vector.extract_strided_slice %21 {offsets = [0, 0], sizes = [16, 8], strides = [1, 1]} : vector<16x32xf32> to vector<16x8xf32>
    %35 = vector.extract_strided_slice %21 {offsets = [0, 8], sizes = [16, 8], strides = [1, 1]} : vector<16x32xf32> to vector<16x8xf32>
    %36 = vector.extract_strided_slice %21 {offsets = [0, 16], sizes = [16, 8], strides = [1, 1]} : vector<16x32xf32> to vector<16x8xf32>
    %37 = vector.extract_strided_slice %21 {offsets = [0, 24], sizes = [16, 8], strides = [1, 1]} : vector<16x32xf32> to vector<16x8xf32>
    %38 = vector.shape_cast %34 : vector<16x8xf32> to vector<1x16x8xf32>
    %39 = vector.shape_cast %35 : vector<16x8xf32> to vector<1x16x8xf32>
    %40 = vector.shape_cast %36 : vector<16x8xf32> to vector<1x16x8xf32>
    %41 = vector.shape_cast %37 : vector<16x8xf32> to vector<1x16x8xf32>
    %42 = tpu.concatenate %38, %39, %40, %41 in 0 : vector<1x16x8xf32>, vector<1x16x8xf32>, vector<1x16x8xf32>, vector<1x16x8xf32> -> vector<4x16x8xf32>
    %43 = vector.extract_strided_slice %22 {offsets = [0, 0], sizes = [16, 8], strides = [1, 1]} : vector<16x16xf32> to vector<16x8xf32>
    %44 = vector.extract_strided_slice %22 {offsets = [0, 0], sizes = [16, 8], strides = [1, 1]} : vector<16x16xf32> to vector<16x8xf32>
    %45 = vector.extract_strided_slice %22 {offsets = [0, 8], sizes = [16, 8], strides = [1, 1]} : vector<16x16xf32> to vector<16x8xf32>
    %46 = vector.extract_strided_slice %22 {offsets = [0, 8], sizes = [16, 8], strides = [1, 1]} : vector<16x16xf32> to vector<16x8xf32>
    %47 = vector.shape_cast %43 : vector<16x8xf32> to vector<1x16x8xf32>
    %48 = vector.shape_cast %44 : vector<16x8xf32> to vector<1x16x8xf32>
    %49 = vector.shape_cast %45 : vector<16x8xf32> to vector<1x16x8xf32>
    %50 = vector.shape_cast %46 : vector<16x8xf32> to vector<1x16x8xf32>
    %51 = tpu.concatenate %47, %48, %49, %50 in 0 : vector<1x16x8xf32>, vector<1x16x8xf32>, vector<1x16x8xf32>, vector<1x16x8xf32> -> vector<4x16x8xf32>
    %52 = vector.extract_strided_slice %23 {offsets = [0, 0], sizes = [16, 8], strides = [1, 1]} : vector<16x16xf32> to vector<16x8xf32>
    %53 = vector.extract_strided_slice %23 {offsets = [0, 0], sizes = [16, 8], strides = [1, 1]} : vector<16x16xf32> to vector<16x8xf32>
    %54 = vector.extract_strided_slice %23 {offsets = [0, 8], sizes = [16, 8], strides = [1, 1]} : vector<16x16xf32> to vector<16x8xf32>
    %55 = vector.extract_strided_slice %23 {offsets = [0, 8], sizes = [16, 8], strides = [1, 1]} : vector<16x16xf32> to vector<16x8xf32>
    %56 = vector.shape_cast %52 : vector<16x8xf32> to vector<1x16x8xf32>
    %57 = vector.shape_cast %53 : vector<16x8xf32> to vector<1x16x8xf32>
    %58 = vector.shape_cast %54 : vector<16x8xf32> to vector<1x16x8xf32>
    %59 = vector.shape_cast %55 : vector<16x8xf32> to vector<1x16x8xf32>
    %60 = tpu.concatenate %56, %57, %58, %59 in 0 : vector<1x16x8xf32>, vector<1x16x8xf32>, vector<1x16x8xf32>, vector<1x16x8xf32> -> vector<4x16x8xf32>
    %61 = vector.extract_strided_slice %24 {offsets = [0, 0], sizes = [16, 8], strides = [1, 1]} : vector<16x16xf32> to vector<16x8xf32>
    %62 = vector.extract_strided_slice %24 {offsets = [0, 0], sizes = [16, 8], strides = [1, 1]} : vector<16x16xf32> to vector<16x8xf32>
    %63 = vector.extract_strided_slice %24 {offsets = [0, 8], sizes = [16, 8], strides = [1, 1]} : vector<16x16xf32> to vector<16x8xf32>
    %64 = vector.extract_strided_slice %24 {offsets = [0, 8], sizes = [16, 8], strides = [1, 1]} : vector<16x16xf32> to vector<16x8xf32>
    %65 = vector.shape_cast %61 : vector<16x8xf32> to vector<1x16x8xf32>
    %66 = vector.shape_cast %62 : vector<16x8xf32> to vector<1x16x8xf32>
    %67 = vector.shape_cast %63 : vector<16x8xf32> to vector<1x16x8xf32>
    %68 = vector.shape_cast %64 : vector<16x8xf32> to vector<1x16x8xf32>
    %69 = tpu.concatenate %65, %66, %67, %68 in 0 : vector<1x16x8xf32>, vector<1x16x8xf32>, vector<1x16x8xf32>, vector<1x16x8xf32> -> vector<4x16x8xf32>
    %70 = vector.shape_cast %2 : vector<16x8xf32> to vector<1x16x8xf32>
    %71 = vector.broadcast %70 : vector<1x16x8xf32> to vector<4x16x8xf32>
    %72 = arith.mulf %33, %71 : vector<4x16x8xf32>
    %73 = vector.shape_cast %3 : vector<16x8xf32> to vector<1x16x8xf32>
    %74 = vector.broadcast %73 : vector<1x16x8xf32> to vector<4x16x8xf32>
    %75 = arith.mulf %42, %74 : vector<4x16x8xf32>
    %76 = arith.addf %72, %75 : vector<4x16x8xf32>
    %77 = vector.shape_cast %2 : vector<16x8xf32> to vector<1x16x8xf32>
    %78 = vector.broadcast %77 : vector<1x16x8xf32> to vector<4x16x8xf32>
    %79 = arith.mulf %51, %78 : vector<4x16x8xf32>
    %80 = vector.shape_cast %3 : vector<16x8xf32> to vector<1x16x8xf32>
    %81 = vector.broadcast %80 : vector<1x16x8xf32> to vector<4x16x8xf32>
    %82 = arith.mulf %60, %81 : vector<4x16x8xf32>
    %83 = arith.addf %79, %82 : vector<4x16x8xf32>
    "tpu.trace_start"() <{level = 10 : i32, message = "hqd,hkd->hqk"}> : () -> ()
    %cst_6 = arith.constant dense<0.000000e+00> : vector<4x16x16xf32>
    %84 = tpu.matmul %76, %83, %cst_6 {dimension_numbers = #tpu.dot_dimension_numbers<[2], [2], [1], [1], [0, 0, 0, 1, 1, 1], [0], [0]>} : vector<4x16x8xf32>, vector<4x16x8xf32>, vector<4x16x16xf32> -> vector<4x16x16xf32>
    "tpu.trace_stop"() : () -> ()
    %85 = vector.shape_cast %4 : vector<16x16xf32> to vector<1x16x16xf32>
    %86 = vector.broadcast %85 : vector<1x16x16xf32> to vector<4x16x16xf32>
    %87 = arith.addf %84, %86 : vector<4x16x16xf32>
    %cst_7 = arith.constant dense<0xFF800000> : vector<4x16xf32>
    %88 = vector.multi_reduction <maximumf>, %87, %cst_7 [2] : vector<4x16x16xf32> to vector<4x16xf32>
    %89 = vector.shape_cast %88 : vector<4x16xf32> to vector<4x16x1xf32>
    %90 = vector.broadcast %89 : vector<4x16x1xf32> to vector<4x16x16xf32>
    %91 = arith.subf %87, %90 : vector<4x16x16xf32>
    %92 = math.exp %91 : vector<4x16x16xf32>
    %cst_8 = arith.constant dense<0.000000e+00> : vector<4x16xf32>
    %93 = vector.multi_reduction <add>, %92, %cst_8 [2] : vector<4x16x16xf32> to vector<4x16xf32>
    %94 = vector.shape_cast %93 : vector<4x16xf32> to vector<4x16x1xf32>
    %95 = tpu.reciprocal %94 {approx = true} : vector<4x16x1xf32> -> vector<4x16x1xf32>
    %96 = vector.broadcast %95 : vector<4x16x1xf32> to vector<4x16x16xf32>
    %97 = arith.mulf %92, %96 : vector<4x16x16xf32>
    "tpu.trace_start"() <{level = 10 : i32, message = "hqk,hkd->hqd"}> : () -> ()
    %cst_9 = arith.constant dense<0.000000e+00> : vector<4x16x8xf32>
    %98 = tpu.matmul %97, %69, %cst_9 {dimension_numbers = #tpu.dot_dimension_numbers<[2], [1], [1], [2], [0, 0, 0, 1, 1, 2], [0], [0]>} : vector<4x16x16xf32>, vector<4x16x8xf32>, vector<4x16x8xf32> -> vector<4x16x8xf32>
    "tpu.trace_stop"() : () -> ()
    %99 = vector.extract_strided_slice %98 {offsets = [0, 0, 0], sizes = [1, 16, 8], strides = [1, 1, 1]} : vector<4x16x8xf32> to vector<1x16x8xf32>
    %100 = vector.shape_cast %99 : vector<1x16x8xf32> to vector<16x8xf32>
    %101 = vector.extract_strided_slice %98 {offsets = [1, 0, 0], sizes = [1, 16, 8], strides = [1, 1, 1]} : vector<4x16x8xf32> to vector<1x16x8xf32>
    %102 = vector.shape_cast %101 : vector<1x16x8xf32> to vector<16x8xf32>
    %103 = vector.extract_strided_slice %98 {offsets = [2, 0, 0], sizes = [1, 16, 8], strides = [1, 1, 1]} : vector<4x16x8xf32> to vector<1x16x8xf32>
    %104 = vector.shape_cast %103 : vector<1x16x8xf32> to vector<16x8xf32>
    %105 = vector.extract_strided_slice %98 {offsets = [3, 0, 0], sizes = [1, 16, 8], strides = [1, 1, 1]} : vector<4x16x8xf32> to vector<1x16x8xf32>
    %106 = vector.shape_cast %105 : vector<1x16x8xf32> to vector<16x8xf32>
    %107 = tpu.concatenate %100, %102, %104, %106 in 1 : vector<16x8xf32>, vector<16x8xf32>, vector<16x8xf32>, vector<16x8xf32> -> vector<16x32xf32>
    %cst_10 = arith.constant dense<0.000000e+00> : vector<16x32xf32>
    %108 = tpu.matmul %107, %8, %cst_10 {dimension_numbers = #tpu.dot_dimension_numbers<[1], [0], [0], [1], [0, 0, 1, 1], [], []>} : vector<16x32xf32>, vector<32x32xf32>, vector<16x32xf32> -> vector<16x32xf32>
    %109 = arith.addf %1, %108 : vector<16x32xf32>
    %110 = arith.mulf %109, %109 : vector<16x32xf32>
    %cst_11 = arith.constant dense<0.000000e+00> : vector<16xf32>
    %111 = vector.multi_reduction <add>, %110, %cst_11 [1] : vector<16x32xf32> to vector<16xf32>
    %112 = vector.shape_cast %111 : vector<16xf32> to vector<16x1xf32>
    %cst_12 = arith.constant 3.200000e+01 : f32
    %113 = vector.broadcast %cst_12 : f32 to vector<16x1xf32>
    %114 = arith.divf %112, %113 : vector<16x1xf32>
    %cst_13 = arith.constant 9.99999997E-7 : f32
    %115 = vector.broadcast %cst_13 : f32 to vector<16x1xf32>
    %116 = arith.addf %114, %115 : vector<16x1xf32>
    %117 = math.rsqrt %116 : vector<16x1xf32>
    %118 = vector.broadcast %117 : vector<16x1xf32> to vector<16x32xf32>
    %119 = arith.mulf %109, %118 : vector<16x32xf32>
    %cst_14 = arith.constant dense<0.000000e+00> : vector<16x128xf32>
    %120 = tpu.matmul %119, %6, %cst_14 {dimension_numbers = #tpu.dot_dimension_numbers<[1], [0], [0], [1], [0, 0, 1, 1], [], []>} : vector<16x32xf32>, vector<32x128xf32>, vector<16x128xf32> -> vector<16x128xf32>
    %121 = vector.extract_strided_slice %120 {offsets = [0, 0], sizes = [16, 64], strides = [1, 1]} : vector<16x128xf32> to vector<16x64xf32>
    %122 = vector.extract_strided_slice %120 {offsets = [0, 64], sizes = [16, 64], strides = [1, 1]} : vector<16x128xf32> to vector<16x64xf32>
    %123 = arith.negf %121 : vector<16x64xf32>
    %124 = math.exp %123 : vector<16x64xf32>
    %cst_15 = arith.constant 1.000000e+00 : f32
    %125 = vector.broadcast %cst_15 : f32 to vector<16x64xf32>
    %126 = arith.addf %125, %124 : vector<16x64xf32>
    %127 = arith.divf %125, %126 : vector<16x64xf32>
    %128 = arith.mulf %121, %127 : vector<16x64xf32>
    %129 = arith.mulf %128, %122 : vector<16x64xf32>
    %c0_16 = arith.constant 0 : index
    %c0_17 = arith.constant 0 : index
    %130 = vector.load %arg3[%c0_16, %c0_17] : memref<64x32xf32, #tpu.memory_space<vmem>>, vector<64x32xf32>
    %cst_18 = arith.constant dense<0.000000e+00> : vector<16x32xf32>
    %131 = tpu.matmul %129, %130, %cst_18 {dimension_numbers = #tpu.dot_dimension_numbers<[1], [0], [0], [1], [0, 0, 1, 1], [], []>} : vector<16x64xf32>, vector<64x32xf32>, vector<16x32xf32> -> vector<16x32xf32>
    %132 = arith.addf %109, %131 : vector<16x32xf32>
    %c0_19 = arith.constant 0 : index
    %c0_20 = arith.constant 0 : index
    %133 = vector.load %arg4[%c0_19, %c0_20] : memref<16x32xf32, #tpu.memory_space<vmem>>, vector<16x32xf32>
    tpu.vector_store %arg4[%c0_19, %c0_20], %132 {strides = array<i32>} : memref<16x32xf32, #tpu.memory_space<vmem>>, vector<16x32xf32>,
    return
  }
  func.func @transform_0(%arg0: i32) -> (i32, i32) {
    %c0_i32 = arith.constant 0 : i32
    %c0_i32_0 = arith.constant 0 : i32
    %c0_i32_1 = arith.constant 0 : i32
    return %c0_i32, %c0_i32_0 : i32, i32
  }
  func.func @transform_1(%arg0: i32) -> (i32, i32) {
    %c0_i32 = arith.constant 0 : i32
    %c0_i32_0 = arith.constant 0 : i32
    %c0_i32_1 = arith.constant 0 : i32
    return %c0_i32, %c0_i32_0 : i32, i32
  }
  func.func @transform_2(%arg0: i32) -> (i32, i32) {
    %c0_i32 = arith.constant 0 : i32
    %c0_i32_0 = arith.constant 0 : i32
    %c0_i32_1 = arith.constant 0 : i32
    return %c0_i32, %c0_i32_0 : i32, i32
  }
  func.func @transform_3(%arg0: i32) -> (i32, i32) {
    %c0_i32 = arith.constant 0 : i32
    %c0_i32_0 = arith.constant 0 : i32
    %c0_i32_1 = arith.constant 0 : i32
    return %c0_i32, %c0_i32_0 : i32, i32
  }
}

</mosaic_0001>

<bundles_post_ra>
// kernel: tpu_custom_call.1
= control target key start
LH: loop header
LB: loop body
LE: loop exit
PB: predicated region body
PF: predicated region fallthrough
CT: control target
= control target key end

     0   :  { %8 = vsyncpa [#allocation3], 0  ;;  %s2066_s0 = inlined_call_operand.hbm [shape: f32[16,64], index: 0, kind: input, shape index: {}]   ;;  %s2067_s1 = inlined_call_operand.vmem [shape: f32[32,272], index: 1, kind: input, shape index: {}]   ;;  %s2068_s2 = inlined_call_operand.vmem [shape: f32[64,32], index: 2, kind: input, shape index: {}]   ;;  %s2069_s3 = inlined_call_operand.hbm [shape: f32[16,32], index: 3, kind: output, shape index: {}]  }
   0x1   :  { %9 = vsyncpa [#allocation4], 0  ;;  %s1734_s12 = smov [#allocation2]  }
   0x2   :  { %s15_s13 = sshll.u32 %s1734_s12, 4  ;;  %s16_s13 = int_to_ptr.vmem [resolvable:$true] %s15_s13 }
   0x3   :  { %s1698_s14 = scalar_lea.vmem %s16_s13, 256  ;;  %p1703_p1 = scmp.lt.s32.totalorder %s16_s13, %s16_s13 }
   0x4   :  { %p1699_p0 = scmp.ne.s32.totalorder %s16_s13, %s1698_s14  ;;  %p1704_p2 = scmp.lt.s32.totalorder %s1698_s14, %s1698_s14 }
   0x6   :  { %p1705_p3 = por %p1704_p2, %p1703_p1 }
   0x8   :  { %p1706_p4 = pnand %p1705_p3, %p1699_p0 }
   0xa   :  { %1709 = shalt.err (!%p1706_p4)
}
   0xb   :  { %s1735_s15 = smov 128   ;;  %s1736_s16 = smov 8  }
   0xc   :  { %21 = dma.hbm_to_vmem [thread:$0]  %s2066_s0, 256, %s16_s13, [#allocation3], %s1735_s15, %s1735_s15, %s1736_s16  }
   0xd   :  { %1730 = dma.done.wait [#allocation3], 256  }
   0xe   :  { %1731 = vsyncadd [#allocation3], 4294967040  ;;  %v1774_v0 = vld [vmem:[#allocation2] sm:$0xff]  ;;  %vm45_vm0 = vcmask 261120   ;;  %v1776_v1 = vld [vmem:[#allocation2 + $0x8] sm:$0xff]  ;;  %s1737_s26 = smov 40  }
   0xf   :  { %v43_v2 = vmul.f32 %v1774_v0, %v1774_v0  ;;  %v44_v3 = vmul.f32 %v1776_v1, %v1776_v1  ;;  %v1787_v6 = vld [vmem:[%s2067_s1 + $0x50] sm:$0xff]  ;;  %v1792_v7 = vld [vmem:[%s2067_s1 + $0x38] sm:$0xff]  ;;  %v1799_v8 = vld [vmem:[%s2067_s1 + $0x20] sm:$0xff]  ;;  %244 = vrot.lane.b32.xlu1 %v1776_v1, %s1737_s26  ;;  %s1738_s27 = smov 120   ;;  %s1739_s28 = smov 32   ;;  %vm284_vm1 = vcmask 64512  }
  0x10   :  { %1520 = vmatprep.subr.mxu1 %v1787_v6  ;;  %v1808_v9 = vld [vmem:[%s2067_s1 + $0x8] sm:$0xff]  ;;  %s1740_s29 = smov 112   ;;  %s1741_s30 = smov 104   ;;  %vm623_vm2 = vcmask 130048   ;;  %vm1076_vm3 = vcmask 195584   ;;  %vm1323_vm4 = vcmask 523264  }
  0x11   :  { %v46_v4 = vsel %vm45_vm0, %v43_v2, 0.0  ;;  %v49_v5 = vsel %vm45_vm0, %v44_v3, 0.0  ;;  %1521 = vmatpush3.msra.mxu1 %v1787_v6  ;;  %s1742_s4 = smov 96   ;;  %s1743_s5 = smov 64  }
  0x12   :  { %47 = vadd.xlane.f32.xlu0 %v46_v4  ;;  %1522 = vmatprep.subr.mxu1 %v1792_v7  ;;  %s1744_s6 = smov 80   ;;  %s1745_s9 = smov 16  }
  0x13   :  { %1523 = vmatpush3.msra.mxu1 %v1792_v7  ;;  %242 = vrot.lane.b32.xlu1 %v1774_v0, %s1737_s26  ;;  %s1746_s18 = smov 24  }
  0x14   :  { %1524 = vmatprep.subr.mxu1 %v1799_v8 }
  0x15   :  { %1525 = vmatpush3.msra.mxu1 %v1799_v8 }
  0x16   :  { %50 = vadd.xlane.f32.xlu0 %v49_v5  ;;  %1526 = vmatprep.subr.mxu1 %v1808_v9 }
  0x17   :  { %1527 = vmatpush3.msra.mxu1 %v1808_v9 }
  0x81   :  { %v245_v22 = vpop.permute.xlu1 %244 }
  0x85   :  { %v243_v24 = vpop.permute.xlu1 %242 }
  0x9b   :  { %v48_v10 = vpop.xlane.xlu0 %47 }
  0x9c   :  { %v53_v11 = vmul.f32 0.03125, %v48_v10 }
  0x9e   :  { %v55_v12 = vadd.f32 1e-06, %v53_v11 }
  0x9f   :  { %v51_v13 = vpop.xlane.xlu0 %50 }
  0xa0   :  { %1642 = vrsqrt.f32 %v55_v12  ;;  %v54_v14 = vmul.f32 0.03125, %v51_v13 }
  0xa2   :  { %v56_v15 = vadd.f32 1e-06, %v54_v14 }
  0xa4   :  { %1644 = vrsqrt.f32 %v56_v15 }
  0xad   :  { %v1643_v16 = vpop.eup %1642 }
  0xae   :  { %v59_v17 = vmul.f32 %v1643_v16, %v1774_v0 }
  0xb0   :  { %1528 = vmatprep.mubr.msk.f32.mxu1 %vm45_vm0, %v59_v17 }
  0xb1   :  { %v1645_v18 = vpop.eup %1644 }
  0xb2   :  { %v60_v19 = vmul.f32 %v1645_v18, %v1776_v1 }
  0xb4   :  { %1529 = vmatmul.mubr.msk.f32.vlgmr.msra.gmra.mxu1 %vm45_vm0, %v60_v19 }
 0x174   :  { %v1818_v20 = vpop.f32.mrf.mxu1 }
 0x175   :  { %146 = vrot.lane.b32.xlu0 %v1818_v20, %s1738_s27  ;;  %v249_v23 = vmul.f32 %v1818_v20, %v245_v22 }
 0x176   :  { %v1821_v21 = vpop.f32.mrf.mxu1 }
 0x177   :  { %144 = vrot.lane.b32.xlu1 %v1821_v21, %s1738_s27  ;;  %v248_v25 = vmul.f32 %v243_v24, %v1821_v21 }
 0x179   :  { %180 = vrot.lane.b32.xlu0 %v1776_v1, %s1738_s27 }
 0x17b   :  { %234 = vrot.lane.b32.xlu1 %v1776_v1, %s1739_s28 }
 0x17d   :  { %152 = vrot.lane.b32.xlu0 %v1818_v20, %s1740_s29 }
 0x17f   :  { %232 = vrot.lane.b32.xlu1 %v1774_v0, %s1739_s28 }
 0x183   :  { %178 = vrot.lane.b32.xlu1 %v1774_v0, %s1738_s27 }
 0x187   :  { %258 = vrot.lane.b32.xlu1 %v249_v23, %s1740_s29 }
 0x18b   :  { %256 = vrot.lane.b32.xlu1 %v248_v25, %s1740_s29 }
 0x1e7   :  { %v1833_v26 = vpop.permute.xlu0 %146 }
 0x1e8   :  { %v251_v27 = vmul.f32 %v245_v22, %v1833_v26 }
 0x1e9   :  { %v1836_v28 = vpop.permute.xlu1 %144 }
 0x1ea   :  { %262 = vrot.lane.b32.xlu1 %v251_v27, %s1740_s29  ;;  %v250_v29 = vmul.f32 %v243_v24, %v1836_v28 }
 0x1eb   :  { %v181_v34 = vpop.permute.xlu0 %180 }
 0x1ec   :  { %260 = vrot.lane.b32.xlu0 %v250_v29, %s1740_s29  ;;  %v185_v38 = vmul.f32 %v1818_v20, %v181_v34  ;;  %v187_v39 = vmul.f32 %v181_v34, %v1833_v26 }
 0x1ed   :  { %v235_v30 = vpop.permute.xlu1 %234 }
 0x1ee   :  { %150 = vrot.lane.b32.xlu1 %v1821_v21, %s1740_s29  ;;  %v239_v35 = vmul.f32 %v1818_v20, %v235_v30  ;;  %v241_v46 = vmul.f32 %v235_v30, %v1833_v26 }
 0x1ef   :  { %v1854_v41 = vpop.permute.xlu0 %152 }
 0x1f0   :  { %158 = vrot.lane.b32.xlu0 %v1818_v20, %s1741_s30  ;;  %v189_v44 = vmul.f32 %v181_v34, %v1854_v41 }
 0x1f1   :  { %v233_v31 = vpop.permute.xlu1 %232 }
 0x1f2   :  { %156 = vrot.lane.b32.xlu1 %v1821_v21, %s1741_s30  ;;  %v238_v43 = vmul.f32 %v233_v31, %v1821_v21  ;;  %v240_v48 = vmul.f32 %v233_v31, %v1836_v28 }
 0x1f4   :  { %164 = vrot.lane.b32.xlu0 %v1774_v0, %s1742_s4 }
 0x1f5   :  { %v179_v32 = vpop.permute.xlu1 %178 }
 0x1f6   :  { %v184_v33 = vmul.f32 %v179_v32, %v1821_v21  ;;  %v186_v40 = vmul.f32 %v179_v32, %v1836_v28 }
 0x1f8   :  { %166 = vrot.lane.b32.xlu0 %v1776_v1, %s1742_s4  ;;  %200 = vrot.lane.b32.xlu1 %v184_v33, %s1742_s4 }
 0x1f9   :  { %v259_v36 = vpop.permute.xlu1 %258 }
 0x1fa   :  { %v269_v37 = vadd.f32 %v259_v36, %v239_v35 }
 0x1fc   :  { %202 = vrot.lane.b32.xlu0 %v185_v38, %s1742_s4  ;;  %276 = vrot.lane.b32.xlu1 %v269_v37, %s1743_s5 }
 0x1fd   :  { %v257_v42 = vpop.permute.xlu1 %256 }
 0x1fe   :  { %v268_v45 = vadd.f32 %v257_v42, %v238_v43 }
 0x200   :  { %206 = vrot.lane.b32.xlu0 %v187_v39, %s1742_s4  ;;  %204 = vrot.lane.b32.xlu1 %v186_v40, %s1742_s4 }
 0x204   :  { %210 = vrot.lane.b32.xlu0 %v189_v44, %s1742_s4  ;;  %274 = vrot.lane.b32.xlu1 %v268_v45, %s1743_s5 }
 0x25c   :  { %v263_v47 = vpop.permute.xlu1 %262 }
 0x25d   :  { %v271_v49 = vadd.f32 %v263_v47, %v241_v46 }
 0x25e   :  { %v261_v50 = vpop.permute.xlu0 %260 }
 0x25f   :  { %v270_v51 = vadd.f32 %v261_v50, %v240_v48  ;;  %455 = vrot.lane.b32.xlu1 %v271_v49, %s1743_s5 }
 0x260   :  { %v151_v52 = vpop.permute.xlu1 %150 }
 0x261   :  { %v188_v53 = vmul.f32 %v179_v32, %v151_v52  ;;  %453 = vrot.lane.b32.xlu0 %v270_v51, %s1743_s5 }
 0x262   :  { %v159_v54 = vpop.permute.xlu0 %158 }
 0x263   :  { %v191_v55 = vmul.f32 %v181_v34, %v159_v54  ;;  %208 = vrot.lane.b32.xlu1 %v188_v53, %s1742_s4 }
 0x264   :  { %v157_v56 = vpop.permute.xlu1 %156 }
 0x265   :  { %v190_v57 = vmul.f32 %v179_v32, %v157_v56  ;;  %214 = vrot.lane.b32.xlu0 %v191_v55, %s1742_s4 }
 0x266   :  { %v165_v58 = vpop.permute.xlu0 %164 }
 0x267   :  { %212 = vrot.lane.b32.xlu1 %v190_v57, %s1742_s4  ;;  %v174_v59 = vmul.f32 %v165_v58, %v151_v52  ;;  %v176_v60 = vmul.f32 %v165_v58, %v157_v56  ;;  %v170_v61 = vmul.f32 %v165_v58, %v1821_v21  ;;  %v172_v10 = vmul.f32 %v165_v58, %v1836_v28 }
 0x269   :  { %280 = vrot.lane.b32.xlu0 %v1776_v1, %s1744_s6 }
 0x26a   :  { %v167_v62 = vpop.permute.xlu0 %166  ;;  %v201_v63 = vpop.permute.xlu1 %200 }
 0x26b   :  { %v224_v2 = vadd.f32 %v201_v63, %v170_v61  ;;  %278 = vrot.lane.b32.xlu1 %v1774_v0, %s1744_s6  ;;  %v177_v3 = vmul.f32 %v167_v62, %v159_v54  ;;  %v171_v15 = vmul.f32 %v1818_v20, %v167_v62  ;;  %v173_v16 = vmul.f32 %v167_v62, %v1833_v26 }
 0x26c   :  { %v175_v25 = vmul.f32 %v167_v62, %v1854_v41 }
 0x26d   :  { %1535 = vmatprep.mubr.msk.f32.mxu1 %vm284_vm1, %v224_v2 }
 0x26e   :  { %v277_v4 = vpop.permute.xlu1 %276  ;;  %v203_v5 = vpop.permute.xlu0 %202 }
 0x26f   :  { %1531 = vmatprep.subr.msk.mxu1 %vm284_vm1, %v277_v4  ;;  %1538 = vmatprep.subr.msk.mxu0 %vm284_vm1, %v277_v4  ;;  %v225_v17 = vadd.f32 %v203_v5, %v171_v15 }
 0x270   :  { %1532 = vmatpush3.xpose.msk.msra.mxu1 %vm284_vm1, %v277_v4  ;;  %1539 = vmatpush3.xpose.msk.msra.mxu0 %vm284_vm1, %v277_v4 }
 0x272   :  { %v205_v11 = vpop.permute.xlu1 %204  ;;  %v207_v13 = vpop.permute.xlu0 %206 }
 0x273   :  { %v226_v12 = vadd.f32 %v205_v11, %v172_v10  ;;  %v227_v18 = vadd.f32 %v207_v13, %v173_v16 }
 0x275   :  { %1542 = vmatprep.mubr.msk.f32.mxu0 %vm284_vm1, %v226_v12 }
 0x276   :  { %v275_v14 = vpop.permute.xlu1 %274  ;;  %v211_v19 = vpop.permute.xlu0 %210 }
 0x277   :  { %1533 = vmatprep.subr.msk.mxu1 %vm284_vm1, %v275_v14  ;;  %1540 = vmatprep.subr.msk.mxu0 %vm284_vm1, %v275_v14  ;;  %v229_v29 = vadd.f32 %v211_v19, %v175_v25 }
 0x278   :  { %1534 = vmatpush3.xpose.msk.msra.mxu1 %vm284_vm1, %v275_v14  ;;  %1541 = vmatpush3.xpose.msk.msra.mxu0 %vm284_vm1, %v275_v14 }
 0x27b   :  { %1536 = vmatmul.mubr.msk.f32.vlgmr.msra.gmra.mxu1 %vm284_vm1, %v225_v17  ;;  %1543 = vmatmul.mubr.msk.f32.vlgmr.msra.gmra.mxu0 %vm284_vm1, %v227_v18 }
 0x2d1   :  { %v456_v22 = vpop.permute.xlu1 %455 }
 0x2d2   :  { %1545 = vmatprep.subr.msk.mxu1 %vm284_vm1, %v456_v22  ;;  %1552 = vmatprep.subr.msk.mxu0 %vm284_vm1, %v456_v22 }
 0x2d3   :  { %v454_v23 = vpop.permute.xlu0 %453  ;;  %1546 = vmatpush3.xpose.msk.msra.mxu1 %vm284_vm1, %v456_v22  ;;  %1553 = vmatpush3.xpose.msk.msra.mxu0 %vm284_vm1, %v456_v22 }
 0x2d4   :  { %1547 = vmatprep.subr.msk.mxu1 %vm284_vm1, %v454_v23  ;;  %1554 = vmatprep.subr.msk.mxu0 %vm284_vm1, %v454_v23 }
 0x2d5   :  { %v209_v24 = vpop.permute.xlu1 %208 }
 0x2d6   :  { %v228_v27 = vadd.f32 %v209_v24, %v174_v59 }
 0x2d7   :  { %1548 = vmatpush3.xpose.msk.msra.mxu1 %vm284_vm1, %v454_v23  ;;  %1555 = vmatpush3.xpose.msk.msra.mxu0 %vm284_vm1, %v454_v23  ;;  %v215_v30 = vpop.permute.xlu0 %214 }
 0x2d8   :  { %1549 = vmatprep.mubr.msk.f32.mxu1 %vm284_vm1, %v228_v27  ;;  %v231_v33 = vadd.f32 %v215_v30, %v177_v3 }
 0x2d9   :  { %v213_v31 = vpop.permute.xlu1 %212 }
 0x2da   :  { %v230_v32 = vadd.f32 %v213_v31, %v176_v60  ;;  %1550 = vmatmul.mubr.msk.f32.vlgmr.msra.gmra.mxu1 %vm284_vm1, %v229_v29 }
 0x2db   :  { %v281_v34 = vpop.permute.xlu0 %280 }
 0x2dc   :  { %1556 = vmatprep.mubr.msk.f32.mxu0 %vm284_vm1, %v230_v32 }
 0x2dd   :  { %1557 = vmatmul.mubr.msk.f32.vlgmr.msra.gmra.mxu0 %vm284_vm1, %v231_v33  ;;  %v279_v35 = vpop.permute.xlu1 %278 }
 0x33b   :  { %v1537_v36 = vpop.f32.mrf.mxu1  ;;  %v1544_v37 = vpop.f32.mrf.mxu0 }
 0x33c   :  { %v367_v38 = vadd.f32 %v1537_v36, %v281_v34  ;;  %v448_v44 = vadd.f32 %v1544_v37, %v281_v34 }
 0x33d   :  { %v361_v39 = vpop.f32.mrf.mxu1  ;;  %v442_v40 = vpop.f32.mrf.mxu0 }
 0x33e   :  { %v627_v41 = vsel %vm623_vm2, %v367_v38, -inf  ;;  %v362_v42 = vadd.f32 %v361_v39, %v279_v35  ;;  %v443_v43 = vadd.f32 %v442_v40, %v279_v35  ;;  %v633_v47 = vsel %vm623_vm2, %v448_v44, -inf }
 0x33f   :  { %628 = vmax.xlane.f32.xlu0 %v627_v41 }
 0x340   :  { %v624_v45 = vsel %vm623_vm2, %v362_v42, -inf  ;;  %v630_v46 = vsel %vm623_vm2, %v443_v43, -inf }
 0x341   :  { %625 = vmax.xlane.f32.xlu1 %v624_v45 }
 0x343   :  { %631 = vmax.xlane.f32.xlu0 %v630_v46  ;;  %v42_v46 = vld [vmem:[%s2067_s1 + $0x58] sm:$0xff] }
 0x345   :  { %634 = vmax.xlane.f32.xlu1 %v633_v47  ;;  %v39_v47 = vld [vmem:[%s2067_s1 + $0x40] sm:$0xff] }
 0x39a   :  { %v1551_v48 = vpop.f32.mrf.mxu1 }
 0x39b   :  { %v539_v49 = vadd.f32 %v1551_v48, %v281_v34 }
 0x39c   :  { %v533_v50 = vpop.f32.mrf.mxu1 }
 0x39d   :  { %v534_v51 = vadd.f32 %v533_v50, %v279_v35  ;;  %v1558_v52 = vpop.f32.mrf.mxu0  ;;  %v639_v53 = vsel %vm623_vm2, %v539_v49, -inf }
 0x39e   :  { %v620_v54 = vadd.f32 %v1558_v52, %v281_v34  ;;  %640 = vmax.xlane.f32.xlu1 %v639_v53 }
 0x39f   :  { %v614_v55 = vpop.f32.mrf.mxu0  ;;  %v636_v56 = vsel %vm623_vm2, %v534_v51, -inf }
 0x3a0   :  { %v615_v57 = vadd.f32 %v614_v55, %v279_v35  ;;  %637 = vmax.xlane.f32.xlu0 %v636_v56  ;;  %v645_v58 = vsel %vm623_vm2, %v620_v54, -inf  ;;  %v33_v55 = vld [vmem:[%s2067_s1 + $0x10] sm:$0xff] }
 0x3a2   :  { %646 = vmax.xlane.f32.xlu1 %v645_v58  ;;  %v642_v59 = vsel %vm623_vm2, %v615_v57, -inf }
 0x3a4   :  { %643 = vmax.xlane.f32.xlu0 %v642_v59 }
 0x3b3   :  { %712 = vrot.lane.b32.xlu1 %v1821_v21, %s1739_s28 }
 0x3ba   :  { %714 = vrot.lane.b32.xlu0 %v1818_v20, %s1739_s28 }
 0x3c8   :  { %v629_v60 = vpop.xlane.xlu0 %628 }
 0x3c9   :  { %v649_v61 = vsub.f32 %v367_v38, %v629_v60 }
 0x3ca   :  { %v626_v62 = vpop.xlane.xlu1 %625 }
 0x3cb   :  { %v658_v63 = vmul.f32 1.442695, %v649_v61  ;;  %v648_v2 = vsub.f32 %v362_v42, %v626_v62 }
 0x3cc   :  { %v632_v3 = vpop.xlane.xlu0 %631 }
 0x3cd   :  { %1646 = vpow2.f32 %v658_v63  ;;  %v656_v4 = vmul.f32 1.442695, %v648_v2  ;;  %v650_v5 = vsub.f32 %v443_v43, %v632_v3 }
 0x3ce   :  { %v635_v10 = vpop.xlane.xlu1 %634 }
 0x3cf   :  { %1648 = vpow2.f32 %v656_v4  ;;  %v660_v11 = vmul.f32 1.442695, %v650_v5  ;;  %v651_v12 = vsub.f32 %v448_v44, %v635_v10 }
 0x3d1   :  { %1650 = vpow2.f32 %v660_v11  ;;  %v662_v13 = vmul.f32 1.442695, %v651_v12 }
 0x3d3   :  { %1652 = vpow2.f32 %v662_v13 }
 0x3da   :  { %v1912_v21 = vpop.eup %1646 }
 0x3db   :  { %v675_v20 = vsel %vm623_vm2, %v1912_v21, 0.0 }
 0x3dc   :  { %v1916_v14 = vpop.eup %1648  ;;  %676 = vadd.xlane.f32.xlu1 %v675_v20 }
 0x3dd   :  { %v672_v15 = vsel %vm623_vm2, %v1916_v14, 0.0 }
 0x3de   :  { %v1920_v16 = vpop.eup %1650  ;;  %673 = vadd.xlane.f32.xlu0 %v672_v15 }
 0x3df   :  { %v678_v18 = vsel %vm623_vm2, %v1920_v16, 0.0 }
 0x3e0   :  { %v1922_v17 = vpop.eup %1652 }
 0x3e1   :  { %v681_v19 = vsel %vm623_vm2, %v1922_v17, 0.0 }
 0x3e2   :  { %679 = vadd.xlane.f32.xlu0 %v678_v18  ;;  %682 = vadd.xlane.f32.xlu1 %v681_v19 }
 0x427   :  { %v641_v22 = vpop.xlane.xlu1 %640 }
 0x428   :  { %v653_v23 = vsub.f32 %v539_v49, %v641_v22 }
 0x429   :  { %v638_v24 = vpop.xlane.xlu0 %637 }
 0x42a   :  { %v666_v25 = vmul.f32 1.442695, %v653_v23  ;;  %v652_v27 = vsub.f32 %v534_v51, %v638_v24 }
 0x42b   :  { %v647_v29 = vpop.xlane.xlu1 %646 }
 0x42c   :  { %1654 = vpow2.f32 %v666_v25  ;;  %v664_v30 = vmul.f32 1.442695, %v652_v27  ;;  %v655_v31 = vsub.f32 %v620_v54, %v647_v29 }
 0x42d   :  { %v644_v32 = vpop.xlane.xlu0 %643 }
 0x42e   :  { %1656 = vpow2.f32 %v664_v30  ;;  %v670_v33 = vmul.f32 1.442695, %v655_v31  ;;  %v654_v34 = vsub.f32 %v615_v57, %v644_v32 }
 0x42f   :  { %v713_v37 = vpop.permute.xlu1 %712 }
 0x430   :  { %1658 = vpow2.f32 %v670_v33  ;;  %v668_v35 = vmul.f32 1.442695, %v654_v34 }
 0x431   :  { %v715_v36 = vpop.permute.xlu0 %714 }
 0x432   :  { %1660 = vpow2.f32 %v668_v35  ;;  %1559 = vmatprep.subr.mxu1 %v715_v36 }
 0x433   :  { %1560 = vmatpush3.msra.mxu1 %v715_v36 }
 0x434   :  { %1561 = vmatprep.subr.mxu1 %v713_v37 }
 0x435   :  { %1562 = vmatpush3.msra.mxu1 %v713_v37 }
 0x436   :  { %1566 = vmatprep.subr.mxu1 %v715_v36 }
 0x439   :  { %v1928_v38 = vpop.eup %1654 }
 0x43a   :  { %v687_v39 = vsel %vm623_vm2, %v1928_v38, 0.0 }
 0x43b   :  { %v1932_v40 = vpop.eup %1656  ;;  %688 = vadd.xlane.f32.xlu1 %v687_v39 }
 0x43c   :  { %v684_v41 = vsel %vm623_vm2, %v1932_v40, 0.0 }
 0x43d   :  { %v1936_v42 = vpop.eup %1658  ;;  %685 = vadd.xlane.f32.xlu0 %v684_v41 }
 0x43e   :  { %v693_v43 = vsel %vm623_vm2, %v1936_v42, 0.0 }
 0x43f   :  { %v1940_v44 = vpop.eup %1660  ;;  %694 = vadd.xlane.f32.xlu1 %v693_v43 }
 0x440   :  { %v690_v45 = vsel %vm623_vm2, %v1940_v44, 0.0 }
 0x441   :  { %691 = vadd.xlane.f32.xlu0 %v690_v45 }
 0x450   :  { %882 = vrot.lane.b32.xlu1 %v1833_v26, %s1739_s28  ;;  %v36_v26 = vld [vmem:[%s2067_s1 + $0x28] sm:$0xff] }
 0x454   :  { %1099 = vrot.lane.b32.xlu1 %v1787_v6, %s1745_s9 }
 0x457   :  { %880 = vrot.lane.b32.xlu0 %v1836_v28, %s1739_s28 }
 0x458   :  { %1095 = vrot.lane.b32.xlu1 %v1792_v7, %s1745_s9 }
 0x45b   :  { %1101 = vrot.lane.b32.xlu0 %v42_v46, %s1745_s9 }
 0x45c   :  { %1091 = vrot.lane.b32.xlu1 %v1799_v8, %s1745_s9 }
 0x45f   :  { %1097 = vrot.lane.b32.xlu0 %v39_v47, %s1745_s9 }
 0x460   :  { %1089 = vrot.lane.b32.xlu1 %v33_v55, %s1745_s9 }
 0x463   :  { %1093 = vrot.lane.b32.xlu0 %v36_v26, %s1745_s9 }
 0x465   :  { %v677_v28 = vpop.xlane.xlu1 %676 }
 0x466   :  { %1662 = vrcp.f32 %v677_v28 }
 0x467   :  { %v674_v6 = vpop.xlane.xlu0 %673  ;;  %1087 = vrot.lane.b32.xlu0 %v1808_v9, %s1745_s9 }
 0x468   :  { %1664 = vrcp.f32 %v674_v6 }
 0x46b   :  { %v680_v48 = vpop.xlane.xlu0 %679  ;;  %v683_v49 = vpop.xlane.xlu1 %682 }
 0x46c   :  { %1666 = vrcp.f32 %v680_v48 }
 0x46d   :  { %1668 = vrcp.f32 %v683_v49 }
 0x473   :  { %v1663_v7 = vpop.eup %1662 }
 0x474   :  { %v705_v52 = vmul.f32 %v1663_v7, %v1912_v21 }
 0x475   :  { %v1665_v50 = vpop.eup %1664 }
 0x476   :  { %v704_v51 = vmul.f32 %v1665_v50, %v1916_v14  ;;  %v34_v50 = vld [vmem:[%s2067_s1 + $0x18] sm:$0xff] }
 0x478   :  { %1563 = vmatprep.mubr.msk.f32.mxu1 %vm623_vm2, %v704_v51  ;;  %v31_v51 = vld [vmem:[%s2067_s1] sm:$0xff] }
 0x479   :  { %v1667_v53 = vpop.eup %1666  ;;  %1564 = vmatmul.mubr.msk.f32.vlgmr.msra.gmra.mxu1 %vm623_vm2, %v705_v52 }
 0x47a   :  { %v1669_v8 = vpop.eup %1668  ;;  %1567 = vmatpush3.msra.mxu1 %v715_v36  ;;  %v706_v54 = vmul.f32 %v1667_v53, %v1920_v16 }
 0x47b   :  { %1568 = vmatprep.subr.mxu1 %v713_v37  ;;  %v707_v9 = vmul.f32 %v1669_v8, %v1922_v17 }
 0x47c   :  { %1569 = vmatpush3.msra.mxu1 %v713_v37  ;;  %1570 = vmatprep.mubr.msk.f32.mxu1 %vm623_vm2, %v706_v54 }
 0x47d   :  { %1571 = vmatmul.mubr.msk.f32.vlgmr.msra.gmra.mxu1 %vm623_vm2, %v707_v9 }
 0x4c4   :  { %v689_v56 = vpop.xlane.xlu1 %688 }
 0x4c5   :  { %1670 = vrcp.f32 %v689_v56 }
 0x4c6   :  { %v686_v57 = vpop.xlane.xlu0 %685 }
 0x4c7   :  { %1672 = vrcp.f32 %v686_v57 }
 0x4c8   :  { %v695_v58 = vpop.xlane.xlu1 %694 }
 0x4c9   :  { %1674 = vrcp.f32 %v695_v58 }
 0x4ca   :  { %v692_v59 = vpop.xlane.xlu0 %691 }
 0x4cb   :  { %1676 = vrcp.f32 %v692_v59 }
 0x4cc   :  { %v883_v60 = vpop.permute.xlu1 %882 }
 0x4cd   :  { %1573 = vmatprep.subr.mxu0 %v883_v60  ;;  %1580 = vmatprep.subr.mxu1 %v883_v60 }
 0x4ce   :  { %v881_v61 = vpop.permute.xlu0 %880  ;;  %1574 = vmatpush3.msra.mxu0 %v883_v60  ;;  %1581 = vmatpush3.msra.mxu1 %v883_v60  ;;  %v1322_v60 = vld [vmem:[%s2068_s2 + $0x38] sm:$0xff] }
 0x4cf   :  { %1575 = vmatprep.subr.mxu0 %v881_v61  ;;  %1582 = vmatprep.subr.mxu1 %v881_v61 }
 0x4d0   :  { %1576 = vmatpush3.msra.mxu0 %v881_v61  ;;  %1583 = vmatpush3.msra.mxu1 %v881_v61  ;;  %v1100_v13 = vpop.permute.xlu1 %1099  ;;  %v1321_v61 = vld [vmem:[%s2068_s2 + $0x30] sm:$0xff] }
 0x4d2   :  { %v1671_v62 = vpop.eup %1670  ;;  %v1102_v12 = vpop.permute.xlu0 %1101 }
 0x4d3   :  { %v709_v3 = vmul.f32 %v1671_v62, %v1928_v38  ;;  %v1106_v16 = vsel %vm623_vm2, %v1100_v13, %v1102_v12  ;;  %v1320_v62 = vld [vmem:[%s2068_s2 + $0x28] sm:$0xff] }
 0x4d4   :  { %v1673_v63 = vpop.eup %1672  ;;  %v1096_v20 = vpop.permute.xlu1 %1095  ;;  %1587 = vmatprep.subr.mxu0 %v1106_v16 }
 0x4d5   :  { %v708_v2 = vmul.f32 %v1673_v63, %v1932_v40  ;;  %v1319_v63 = vld [vmem:[%s2068_s2 + $0x20] sm:$0xff] }
 0x4d6   :  { %v1675_v4 = vpop.eup %1674  ;;  %v1098_v21 = vpop.permute.xlu0 %1097 }
 0x4d7   :  { %1577 = vmatprep.mubr.msk.f32.mxu0 %vm623_vm2, %v708_v2  ;;  %v711_v11 = vmul.f32 %v1675_v4, %v1936_v42  ;;  %v1105_v17 = vsel %vm623_vm2, %v1096_v20, %v1098_v21  ;;  %v1318_v2 = vld [vmem:[%s2068_s2 + $0x18] sm:$0xff]  ;;  %v1316_v4 = vld [vmem:[%s2068_s2 + $0x8] sm:$0xff] }
 0x4d8   :  { %v1677_v5 = vpop.eup %1676  ;;  %1578 = vmatmul.mubr.msk.f32.vlgmr.msra.gmra.mxu0 %vm623_vm2, %v709_v3  ;;  %v1092_v15 = vpop.permute.xlu1 %1091  ;;  %v1317_v3 = vld [vmem:[%s2068_s2 + $0x10] sm:$0xff] }
 0x4d9   :  { %v710_v10 = vmul.f32 %v1677_v5, %v1940_v44  ;;  %1588 = vmatpush3.msra.mxu0 %v1106_v16  ;;  %v1315_v5 = vld [vmem:[%s2068_s2] sm:$0xff]  ;;  %s1747_s2 = smov [#allocation5]  }
 0x4da   :  { %v1094_v14 = vpop.permute.xlu0 %1093  ;;  %1589 = vmatprep.subr.mxu0 %v1105_v17 }
 0x4db   :  { %1584 = vmatprep.mubr.msk.f32.mxu1 %vm623_vm2, %v710_v10  ;;  %v1104_v18 = vsel %vm623_vm2, %v1092_v15, %v1094_v14  ;;  %1590 = vmatpush3.msra.mxu0 %v1105_v17 }
 0x4dc   :  { %1585 = vmatmul.mubr.msk.f32.vlgmr.msra.gmra.mxu1 %vm623_vm2, %v711_v11  ;;  %v1090_v22 = vpop.permute.xlu1 %1089  ;;  %1591 = vmatprep.subr.mxu0 %v1104_v18 }
 0x4dd   :  { %1592 = vmatpush3.msra.mxu0 %v1104_v18 }
 0x4de   :  { %v1088_v19 = vpop.permute.xlu0 %1087 }
 0x4df   :  { %v1103_v23 = vsel %vm623_vm2, %v1088_v19, %v1090_v22 }
 0x4e0   :  { %1593 = vmatprep.subr.mxu0 %v1103_v23 }
 0x4e1   :  { %1594 = vmatpush3.msra.mxu0 %v1103_v23 }
 0x4e2   :  { %1609 = vmatprep.subr.mxu0 %v1322_v60 }
 0x539   :  { %v1565_v24 = vpop.f32.mrf.mxu1 }
 0x53b   :  { %v790_v25 = vpop.f32.mrf.mxu1 }
 0x53d   :  { %v1572_v27 = vpop.f32.mrf.mxu1 }
 0x53e   :  { %1052 = vrot.lane.b32.xlu0 %v1572_v27, %s1736_s16 }
 0x53f   :  { %v871_v29 = vpop.f32.mrf.mxu1 }
 0x540   :  { %1050 = vrot.lane.b32.xlu1 %v871_v29, %s1736_s16 }
 0x598   :  { %v1579_v30 = vpop.f32.mrf.mxu0 }
 0x599   :  { %1060 = vrot.lane.b32.xlu0 %v1579_v30, %s1745_s9 }
 0x59a   :  { %v958_v31 = vpop.f32.mrf.mxu0 }
 0x59b   :  { %1058 = vrot.lane.b32.xlu1 %v958_v31, %s1745_s9 }
 0x59c   :  { %v1586_v32 = vpop.f32.mrf.mxu1 }
 0x59d   :  { %1068 = vrot.lane.b32.xlu0 %v1586_v32, %s1746_s18 }
 0x59e   :  { %v1039_v33 = vpop.f32.mrf.mxu1 }
 0x59f   :  { %1066 = vrot.lane.b32.xlu1 %v1039_v33, %s1746_s18 }
 0x5b0   :  { %v1053_v34 = vpop.permute.xlu0 %1052 }
 0x5b1   :  { %v1073_v40 = vsel %vm284_vm1, %v1565_v24, %v1053_v34 }
 0x5b2   :  { %v1051_v35 = vpop.permute.xlu1 %1050 }
 0x5b3   :  { %v1072_v38 = vsel %vm284_vm1, %v790_v25, %v1051_v35 }
 0x60b   :  { %v1061_v36 = vpop.permute.xlu0 %1060 }
 0x60c   :  { %v1075_v43 = vsel %vm623_vm2, %v1073_v40, %v1061_v36 }
 0x60d   :  { %v1059_v37 = vpop.permute.xlu1 %1058 }
 0x60e   :  { %v1074_v41 = vsel %vm623_vm2, %v1072_v38, %v1059_v37 }
 0x60f   :  { %v1069_v39 = vpop.permute.xlu0 %1068 }
 0x610   :  { %v1078_v45 = vsel %vm1076_vm3, %v1075_v43, %v1069_v39 }
 0x611   :  { %v1067_v42 = vpop.permute.xlu1 %1066 }
 0x612   :  { %v1077_v44 = vsel %vm1076_vm3, %v1074_v41, %v1067_v42 }
 0x613   :  { %1595 = vmatprep.mubr.msk.f32.mxu0 %vm45_vm0, %v1077_v44 }
 0x614   :  { %1596 = vmatmul.mubr.msk.f32.vlgmr.msra.gmra.mxu0 %vm45_vm0, %v1078_v45 }
 0x615   :  { %1610 = vmatpush3.msra.mxu0 %v1322_v60 }
 0x616   :  { %1611 = vmatprep.subr.mxu0 %v1321_v61 }
 0x617   :  { %1612 = vmatpush3.msra.mxu0 %v1321_v61 }
 0x618   :  { %1613 = vmatprep.subr.mxu0 %v1320_v62 }
 0x619   :  { %1614 = vmatpush3.msra.mxu0 %v1320_v62 }
 0x61a   :  { %1615 = vmatprep.subr.mxu0 %v1319_v63 }
 0x61b   :  { %1616 = vmatpush3.msra.mxu0 %v1319_v63 }
 0x61c   :  { %1617 = vmatprep.subr.mxu0 %v1318_v2 }
 0x61d   :  { %1618 = vmatpush3.msra.mxu0 %v1318_v2 }
 0x61e   :  { %1619 = vmatprep.subr.mxu0 %v1317_v3 }
 0x61f   :  { %1620 = vmatpush3.msra.mxu0 %v1317_v3 }
 0x620   :  { %1621 = vmatprep.subr.mxu0 %v1316_v4 }
 0x621   :  { %1622 = vmatpush3.msra.mxu0 %v1316_v4 }
 0x622   :  { %1623 = vmatprep.subr.mxu0 %v1315_v5 }
 0x623   :  { %1624 = vmatpush3.msra.mxu0 %v1315_v5 }
 0x6d4   :  { %v1597_v46 = vpop.f32.mrf.mxu0 }
 0x6d5   :  { %v2003_v47 = vadd.f32 %v1597_v46, %v1776_v1  ;;  %v40_v1 = vld [vmem:[%s2067_s1 + $0x48] sm:$0xff] }
 0x6d6   :  { %v1183_v26 = vpop.f32.mrf.mxu0  ;;  %1598 = vmatprep.subr.mxu1 %v40_v1 }
 0x6d7   :  { %v2006_v28 = vadd.f32 %v1183_v26, %v1774_v0  ;;  %v1195_v6 = vmul.f32 %v2003_v47, %v2003_v47  ;;  %v37_v0 = vld [vmem:[%s2067_s1 + $0x30] sm:$0xff]  ;;  %1599 = vmatpush3.msra.mxu1 %v40_v1 }
 0x6d8   :  { %1600 = vmatprep.subr.mxu1 %v37_v0 }
 0x6d9   :  { %v1199_v48 = vsel %vm45_vm0, %v1195_v6, 0.0  ;;  %v1194_v49 = vmul.f32 %v2006_v28, %v2006_v28  ;;  %1601 = vmatpush3.msra.mxu1 %v37_v0 }
 0x6da   :  { %1200 = vadd.xlane.f32.xlu0 %v1199_v48  ;;  %1602 = vmatprep.subr.mxu1 %v34_v50 }
 0x6db   :  { %v1196_v7 = vsel %vm45_vm0, %v1194_v49, 0.0  ;;  %1603 = vmatpush3.msra.mxu1 %v34_v50 }
 0x6dc   :  { %1197 = vadd.xlane.f32.xlu1 %v1196_v7  ;;  %1604 = vmatprep.subr.mxu1 %v31_v51 }
 0x6dd   :  { %1605 = vmatpush3.msra.mxu1 %v31_v51 }
 0x763   :  { %v1201_v52 = vpop.xlane.xlu0 %1200 }
 0x764   :  { %v1203_v53 = vmul.f32 0.03125, %v1201_v52 }
 0x765   :  { %v1198_v8 = vpop.xlane.xlu1 %1197 }
 0x766   :  { %v1205_v54 = vadd.f32 1e-06, %v1203_v53  ;;  %v1202_v9 = vmul.f32 0.03125, %v1198_v8 }
 0x768   :  { %v1204_v55 = vadd.f32 1e-06, %v1202_v9  ;;  %1678 = vrsqrt.f32 %v1205_v54 }
 0x76a   :  { %1680 = vrsqrt.f32 %v1204_v55 }
 0x775   :  { %v1679_v56 = vpop.eup %1678 }
 0x776   :  { %v1209_v59 = vmul.f32 %v1679_v56, %v2003_v47 }
 0x777   :  { %v1681_v57 = vpop.eup %1680 }
 0x778   :  { %v1208_v58 = vmul.f32 %v1681_v57, %v2006_v28 }
 0x77a   :  { %1606 = vmatprep.mubr.msk.f32.mxu1 %vm45_vm0, %v1208_v58 }
 0x77b   :  { %1607 = vmatmul.mubr.msk.f32.vlgmr.msra.gmra.mxu1 %vm45_vm0, %v1209_v59 }
 0x83b   :  { %v1608_v10 = vpop.f32.mrf.mxu1 }
 0x83c   :  { %1309 = vrot.lane.b32.xlu1 %v1608_v10, %s1743_s5  ;;  %v1457_v13 = vmul.f32 -1.442695, %v1608_v10 }
 0x83d   :  { %v1282_v11 = vpop.f32.mrf.mxu1 }
 0x83e   :  { %1307 = vrot.lane.b32.xlu0 %v1282_v11, %s1743_s5  ;;  %v1456_v12 = vmul.f32 -1.442695, %v1282_v11  ;;  %s1414_s5 = sshll.u32 %s1747_s2, 4  ;;  %s1415_s5 = int_to_ptr.vmem [resolvable:$true] %s1414_s5 }
 0x83f   :  { %s1710_s17 = scalar_lea.vmem %s1415_s5, 256  ;;  %p1715_p6 = scmp.lt.s32.totalorder %s1415_s5, %s1415_s5 }
 0x840   :  { %1682 = vpow2.f32 %v1456_v12  ;;  %p1711_p5 = scmp.ne.s32.totalorder %s1415_s5, %s1710_s17  ;;  %p1716_p7 = scmp.lt.s32.totalorder %s1710_s17, %s1710_s17 }
 0x841   :  { %1684 = vpow2.f32 %v1457_v13 }
 0x842   :  { %p1717_p8 = por %p1716_p7, %p1715_p6 }
 0x844   :  { %p1718_p9 = pnand %p1717_p8, %p1711_p5 }
 0x84d   :  { %v1683_v21 = vpop.eup %1682 }
 0x84e   :  { %v1685_v20 = vpop.eup %1684  ;;  %v1297_v14 = vadd.f32 1.0, %v1683_v21 }
 0x84f   :  { %v1298_v15 = vadd.f32 1.0, %v1685_v20 }
 0x850   :  { %1686 = vrcp.f32 %v1297_v14 }
 0x851   :  { %1688 = vrcp.f32 %v1298_v15 }
 0x85d   :  { %v1687_v16 = vpop.eup %1686 }
 0x85e   :  { %v1689_v17 = vpop.eup %1688  ;;  %v1303_v18 = vmul.f32 %v1687_v16, %v1282_v11 }
 0x85f   :  { %v1304_v22 = vmul.f32 %v1689_v17, %v1608_v10 }
 0x8ae   :  { %v1310_v19 = vpop.permute.xlu1 %1309 }
 0x8af   :  { %v1314_v25 = vmul.f32 %v1310_v19, %v1304_v22 }
 0x8b0   :  { %v1308_v23 = vpop.permute.xlu0 %1307 }
 0x8b1   :  { %v1313_v24 = vmul.f32 %v1308_v23, %v1303_v18 }
 0x8b3   :  { %1625 = vmatprep.mubr.msk.f32.mxu0 %vm1323_vm4, %v1313_v24 }
 0x8b4   :  { %1626 = vmatmul.mubr.msk.f32.vlgmr.msra.gmra.mxu0 %vm1323_vm4, %v1314_v25 }
 0x974   :  { %v1627_v27 = vpop.f32.mrf.mxu0 }
 0x975   :  { %v1406_v29 = vadd.f32 %v1627_v27, %v2003_v47 }
 0x976   :  { %v1396_v30 = vpop.f32.mrf.mxu0 }
 0x977   :  { %1408 = vst.msk [vmem:[#allocation5 + $0x8] sm:$0xff] %vm45_vm0, %v1406_v29  ;;  %v1405_v31 = vadd.f32 %v1396_v30, %v2006_v28 }
 0x979   :  { %1407 = vst.msk [vmem:[#allocation5] sm:$0xff] %vm45_vm0, %v1405_v31 }
 0x97a   :  { %1721 = shalt.err (!%p1718_p9)
}
 0x97b   :  { %1420 = dma.vmem_to_hbm [thread:$0]  %s1415_s5, 256, %s2069_s3, [#allocation4], %s1735_s15, %s1735_s15, %s1736_s16  }
 0x97c   :  { %1732 = dma.done.wait [#allocation4], 256  }
 0x97d   :  { %1733 = vsyncadd [#allocation4], 4294967040 }
 0x97e   :  { %1424 = vsyncpa [#allocation3], 1 }
 0x97f   :  { %1425 = vsyncpa [#allocation4], 1 }

</bundles_post_ra>
